<compile_context>
chip_gen: v7x
topology: tpu7x:2x2x1
jax: 0.10.0
libtpu: 0.0.40
codegen_flags: <defaults>
</compile_context>

<pallas_src>
import jax
import jax.numpy as jnp
from jax import lax
from jax.experimental import pallas as pl
from jax.experimental.pallas import tpu as pltpu

EPS = 1e-5


def _round_up(x, m):
    return (x + m - 1) // m * m


def _vmem_limit(tile_bytes):
    # Footprint-derived limit (double-buffered tiles + compiler scratch),
    # clamped to <= 48 MiB so the same kernel fits v7x's 64 MiB per-TC VMEM.
    return int(max(16 << 20, min(48 << 20, 2 * tile_bytes + (8 << 20))))


def _conv_stats_kernel(patch_ref, w_ref, conv_ref, sum_ref, sq_ref):
    """Pass 1: conv-as-matmul + streaming per-channel sum / sum-of-squares."""
    @pl.when(pl.program_id(0) == 0)
    def _():
        sum_ref[...] = jnp.zeros_like(sum_ref)
        sq_ref[...] = jnp.zeros_like(sq_ref)

    acc = jnp.dot(patch_ref[...], w_ref[...],
                  preferred_element_type=jnp.float32)        # (TM, Cp) f32
    conv_ref[...] = acc
    sum_ref[...] += jnp.sum(acc, axis=0, keepdims=True)
    sq_ref[...] += jnp.sum(acc * acc, axis=0, keepdims=True)


def _bn_relu_kernel(conv_ref, mean_ref, var_ref, gamma_ref, beta_ref, out_ref):
    """Pass 2: BatchNorm affine + ReLU, lane-dense elementwise."""
    inv_std = lax.rsqrt(var_ref[...] + EPS)                  # EUP slot
    scale = inv_std * gamma_ref[...]
    shift = beta_ref[...] - mean_ref[...] * scale
    out_ref[...] = jnp.maximum(conv_ref[...] * scale + shift, 0.0)


def unet_up(x, weight, skip, gamma, beta, *, tile_m=256):
    """x: (N, Cin, H, W) f32; weight: (Cin, Cout, 4, 4) (PyTorch ConvTranspose2d
    layout); skip: (N, Cskip, 2H, 2W); gamma/beta: (Cout,).  Returns
    (N, Cout + Cskip, 2H, 2W) = cat(ReLU(BN(convT(x))), skip)."""
    N, Cin, H, W = x.shape
    cin_w, Cout, kh_, kw_ = weight.shape
    assert (cin_w, kh_, kw_) == (Cin, 4, 4)
    OH, OW = 2 * H, 2 * W

    Cpp = _round_up(Cout, 32)       # per-parity padded out-channels
    Cp = 4 * Cpp                    # lane-dense output width (multiple of 128)
    K = Cin * 9
    Kp = _round_up(K, 128)          # 128-aligned contraction depth

    # ---- glue: shared 3x3-neighbourhood im2col (pad=1) ----------------------
    xp = jnp.pad(x, ((0, 0), (0, 0), (1, 1), (1, 1)))
    cols = []
    for r in range(3):
        for c in range(3):
            cols.append(xp[:, :, r:r + H, c:c + W])          # (N, Cin, H, W)
    patches = jnp.stack(cols, axis=2)                        # (N, Cin, 9, H, W)
    patches = patches.transpose(0, 3, 4, 1, 2).reshape(N * H * W, K)

    M = N * H * W
    TM = tile_m if M >= tile_m else _round_up(M, 8)
    Mp = _round_up(M, TM)
    patches = jnp.pad(patches, ((0, Mp - M), (0, Kp - K))).astype(jnp.bfloat16)
    # TODO(synk): patch extraction could move fully in-kernel (DMA input slabs,
    # 4 shifted matmuls) to drop the remaining 9x host-side replication.

    # ---- glue: weight -> (Kp, Cp); columns = [parity (dh,dw), out channel] --
    # output (2a+dh, 2b+dw) tap at neighbour (r, c) uses kernel (dh-2r+3, dw-2c+3)
    w_full = jnp.zeros((Cin, 3, 3, 2, 2, Cpp), jnp.float32)
    for dh in range(2):
        for r in range(3):
            kh = dh - 2 * r + 3
            if not 0 <= kh <= 3:
                continue
            for dw in range(2):
                for c in range(3):
                    kw = dw - 2 * c + 3
                    if not 0 <= kw <= 3:
                        continue
                    w_full = w_full.at[:, r, c, dh, dw, :Cout].set(
                        weight[:, :, kh, kw])
    w_mat = jnp.pad(w_full.reshape(K, Cp), ((0, Kp - K), (0, 0)))
    w_mat = w_mat.astype(jnp.bfloat16)

    # ---- pass 1: conv matmul + streaming batch statistics -------------------
    bytes1 = TM * Kp * 2 + Kp * Cp * 2 + TM * Cp * 4 + 2 * Cp * 4
    conv, col_sum, col_sq = pl.pallas_call(
        _conv_stats_kernel,
        out_shape=(
            jax.ShapeDtypeStruct((Mp, Cp), jnp.float32),
            jax.ShapeDtypeStruct((1, Cp), jnp.float32),
            jax.ShapeDtypeStruct((1, Cp), jnp.float32),
        ),
        grid_spec=pltpu.PrefetchScalarGridSpec(
            num_scalar_prefetch=0,
            grid=(Mp // TM,),
            in_specs=[
                pl.BlockSpec((TM, Kp), lambda i: (i, 0)),
                pl.BlockSpec((Kp, Cp), lambda i: (0, 0)),
            ],
            out_specs=[
                pl.BlockSpec((TM, Cp), lambda i: (i, 0)),
                pl.BlockSpec((1, Cp), lambda i: (0, 0)),   # resident accumulator
                pl.BlockSpec((1, Cp), lambda i: (0, 0)),   # resident accumulator
            ],
        ),
        compiler_params=pltpu.CompilerParams(
            dimension_semantics=("arbitrary",),   # stats reduce across M tiles
            vmem_limit_bytes=_vmem_limit(bytes1)),
    )(patches, w_mat)

    # ---- glue: O(Cout) statistic combine across the 4 parity column groups --
    count = jnp.float32(N * OH * OW)
    sum_pc = col_sum.reshape(4, Cpp).sum(axis=0)
    sq_pc = col_sq.reshape(4, Cpp).sum(axis=0)
    mean_pc = sum_pc / count
    var_pc = jnp.maximum(sq_pc / count - mean_pc * mean_pc, 0.0)  # biased var

    gamma_pc = jnp.zeros((Cpp,), jnp.float32).at[:Cout].set(gamma)
    beta_pc = jnp.zeros((Cpp,), jnp.float32).at[:Cout].set(beta)

    mean_col = jnp.tile(mean_pc, 4).reshape(1, Cp)
    var_col = jnp.tile(var_pc, 4).reshape(1, Cp)
    gamma_col = jnp.tile(gamma_pc, 4).reshape(1, Cp)
    beta_col = jnp.tile(beta_pc, 4).reshape(1, Cp)

    # ---- pass 2: BatchNorm affine + ReLU (parallel -> both TCs on v7x) ------
    bytes2 = 2 * TM * Cp * 4 + 4 * Cp * 4
    y = pl.pallas_call(
        _bn_relu_kernel,
        out_shape=jax.ShapeDtypeStruct((Mp, Cp), jnp.float32),
        grid_spec=pltpu.PrefetchScalarGridSpec(
            num_scalar_prefetch=0,
            grid=(Mp // TM,),
            in_specs=[
                pl.BlockSpec((TM, Cp), lambda i: (i, 0)),
                pl.BlockSpec((1, Cp), lambda i: (0, 0)),
                pl.BlockSpec((1, Cp), lambda i: (0, 0)),
                pl.BlockSpec((1, Cp), lambda i: (0, 0)),
                pl.BlockSpec((1, Cp), lambda i: (0, 0)),
            ],
            out_specs=pl.BlockSpec((TM, Cp), lambda i: (i, 0)),
        ),
        compiler_params=pltpu.CompilerParams(
            dimension_semantics=("parallel",),
            vmem_limit_bytes=_vmem_limit(bytes2)),
    )(conv, mean_col, var_col, gamma_col, beta_col)

    # ---- glue: parity interleave back to NCHW + channel concat with skip ----
    y = y[:M].reshape(N, H, W, 2, 2, Cpp)[..., :Cout]        # (N, a, b, dh, dw, co)
    y = y.transpose(0, 5, 1, 3, 2, 4).reshape(N, Cout, OH, OW)
    # TODO(synk): NCHW output + concat kept in XLA glue (pure layout plumbing);
    # a channels-last pipeline would drop this transpose entirely.
    return jnp.concatenate([y, skip], axis=1)


def _reference(x, weight, skip, gamma, beta):
    # ConvTranspose2d(k=4, s=2, p=1, bias=False) == stride-1 conv of the
    # 2x zero-dilated input, padded by k-1-p = 2, with the spatially flipped,
    # (Cin, Cout) -> (Cout, Cin) transposed kernel.
    w_flip = jnp.transpose(weight, (1, 0, 2, 3))[:, :, ::-1, ::-1]
    conv = lax.conv_general_dilated(
        x, w_flip, window_strides=(1, 1), padding=((2, 2), (2, 2)),
        lhs_dilation=(2, 2), dimension_numbers=("NCHW", "OIHW", "NCHW"))
    mean = conv.mean(axis=(0, 2, 3), keepdims=True)
    var = conv.var(axis=(0, 2, 3), keepdims=True)   # biased, PyTorch BN training
    yb = (conv - mean) / jnp.sqrt(var + EPS)
    yb = yb * gamma[None, :, None, None] + beta[None, :, None, None]
    yb = jnp.maximum(yb, 0.0)
    return jnp.concatenate([yb, skip], axis=1)


if __name__ == "__main__":
    key = jax.random.PRNGKey(0)
    k_x, k_w, k_s, k_g, k_b = jax.random.split(key, 5)

    N, Cin, H, W = 2, 4, 16, 16
    Cout = 8
    Cskip = 8

    x = jax.random.normal(k_x, (N, Cin, H, W), dtype=jnp.float32)
    weight = jax.random.normal(k_w, (Cin, Cout, 4, 4), dtype=jnp.float32) * 0.1
    skip = jax.random.normal(k_s, (N, Cskip, 2 * H, 2 * W), dtype=jnp.float32)
    gamma = 1.0 + 0.1 * jax.random.normal(k_g, (Cout,), dtype=jnp.float32)
    beta = 0.1 * jax.random.normal(k_b, (Cout,), dtype=jnp.float32)
    # TODO(synk): dropout=0.0 in the reference module -> no dropout layer emitted.
    # TODO(synk): BatchNorm running_mean/var are not updated (forward-only,
    # training-mode batch statistics, matching a fresh module's forward).

    out = unet_up(x, weight, skip, gamma, beta)
    out = jax.block_until_ready(out)
    assert out.shape == (N, Cout + Cskip, 2 * H, 2 * W)

    # Loose check vs full-f32 reference (kernel uses bf16 MXU operands).
    ref_f32 = _reference(x, weight, skip, gamma, beta)
    assert jnp.allclose(out, ref_f32, atol=5e-2, rtol=5e-2)

    # Tight check vs matched-precision reference (bf16-rounded conv operands).
    ref_bf16 = _reference(
        x.astype(jnp.bfloat16).astype(jnp.float32),
        weight.astype(jnp.bfloat16).astype(jnp.float32), skip, gamma, beta)
    assert jnp.allclose(out, ref_bf16, atol=2e-3, rtol=2e-3)

    print("KERNEL_OK")
</pallas_src>

<mosaic_0001>
module attributes {stable_mosaic.version = 11 : i64} {
  func.func @_conv_stats_kernel(%arg0: i32, %arg1: memref<256x128xbf16, #tpu.memory_space<vmem>>, %arg2: memref<128x128xbf16, #tpu.memory_space<vmem>>, %arg3: memref<256x128xf32, #tpu.memory_space<vmem>>, %arg4: memref<1x128xf32, #tpu.memory_space<vmem>>, %arg5: memref<1x128xf32, #tpu.memory_space<vmem>>) attributes {dimension_semantics = [#tpu.dimension_semantics<arbitrary>], iteration_bounds = array<i64: 2>, scalar_prefetch = 0 : i64, scratch_operands = 0 : i64, tpu.core_type = #tpu.core_type<tc>, window_params = [{transform_indices = @transform_0, window_bounds = array<i64: 256, 128>}, {pipeline_mode = #tpu.pipeline_mode<synchronous>, transform_indices = @transform_1, window_bounds = array<i64: 128, 128>}, {transform_indices = @transform_2, window_bounds = array<i64: 256, 128>}, {pipeline_mode = #tpu.pipeline_mode<synchronous>, transform_indices = @transform_3, window_bounds = array<i64: 1, 128>}, {pipeline_mode = #tpu.pipeline_mode<synchronous>, transform_indices = @transform_4, window_bounds = array<i64: 1, 128>}]} {
    %c0_i32 = arith.constant 0 : i32
    %0 = arith.cmpi eq, %arg0, %c0_i32 : i32
    %1 = arith.extui %0 : i1 to i32
    %c0_i32_0 = arith.constant 0 : i32
    %2 = arith.cmpi ne, %1, %c0_i32_0 : i32
    scf.if %2 {
      %cst_16 = arith.constant 0.000000e+00 : f32
      %18 = vector.broadcast %cst_16 : f32 to vector<1x128xf32>
      %c0_17 = arith.constant 0 : index
      %c0_18 = arith.constant 0 : index
      %19 = vector.load %arg4[%c0_17, %c0_18] : memref<1x128xf32, #tpu.memory_space<vmem>>, vector<1x128xf32>
      tpu.vector_store %arg4[%c0_17, %c0_18], %18 {strides = array<i32>} : memref<1x128xf32, #tpu.memory_space<vmem>>, vector<1x128xf32>,
      %cst_19 = arith.constant 0.000000e+00 : f32
      %20 = vector.broadcast %cst_19 : f32 to vector<1x128xf32>
      %c0_20 = arith.constant 0 : index
      %c0_21 = arith.constant 0 : index
      %21 = vector.load %arg5[%c0_20, %c0_21] : memref<1x128xf32, #tpu.memory_space<vmem>>, vector<1x128xf32>
      tpu.vector_store %arg5[%c0_20, %c0_21], %20 {strides = array<i32>} : memref<1x128xf32, #tpu.memory_space<vmem>>, vector<1x128xf32>,
    } else {
    }
    %c0 = arith.constant 0 : index
    %c0_1 = arith.constant 0 : index
    %3 = vector.load %arg1[%c0, %c0_1] : memref<256x128xbf16, #tpu.memory_space<vmem>>, vector<256x128xbf16>
    %c0_2 = arith.constant 0 : index
    %c0_3 = arith.constant 0 : index
    %4 = vector.load %arg2[%c0_2, %c0_3] : memref<128x128xbf16, #tpu.memory_space<vmem>>, vector<128x128xbf16>
    %cst = arith.constant dense<0.000000e+00> : vector<256x128xf32>
    %5 = tpu.matmul %3, %4, %cst {dimension_numbers = #tpu.dot_dimension_numbers<[1], [0], [0], [1], [0, 0, 1, 1], [], []>} : vector<256x128xbf16>, vector<128x128xbf16>, vector<256x128xf32> -> vector<256x128xf32>
    %c0_4 = arith.constant 0 : index
    %c0_5 = arith.constant 0 : index
    %6 = vector.load %arg3[%c0_4, %c0_5] : memref<256x128xf32, #tpu.memory_space<vmem>>, vector<256x128xf32>
    tpu.vector_store %arg3[%c0_4, %c0_5], %5 {strides = array<i32>} : memref<256x128xf32, #tpu.memory_space<vmem>>, vector<256x128xf32>,
    %c0_6 = arith.constant 0 : index
    %c0_7 = arith.constant 0 : index
    %7 = vector.load %arg4[%c0_6, %c0_7] : memref<1x128xf32, #tpu.memory_space<vmem>>, vector<1x128xf32>
    %cst_8 = arith.constant dense<0.000000e+00> : vector<128xf32>
    %8 = vector.multi_reduction <add>, %5, %cst_8 [0] : vector<256x128xf32> to vector<128xf32>
    %9 = vector.shape_cast %8 : vector<128xf32> to vector<1x128xf32>
    %10 = arith.addf %7, %9 : vector<1x128xf32>
    %c0_9 = arith.constant 0 : index
    %c0_10 = arith.constant 0 : index
    %11 = vector.load %arg4[%c0_9, %c0_10] : memref<1x128xf32, #tpu.memory_space<vmem>>, vector<1x128xf32>
    tpu.vector_store %arg4[%c0_9, %c0_10], %10 {strides = array<i32>} : memref<1x128xf32, #tpu.memory_space<vmem>>, vector<1x128xf32>,
    %c0_11 = arith.constant 0 : index
    %c0_12 = arith.constant 0 : index
    %12 = vector.load %arg5[%c0_11, %c0_12] : memref<1x128xf32, #tpu.memory_space<vmem>>, vector<1x128xf32>
    %13 = arith.mulf %5, %5 : vector<256x128xf32>
    %cst_13 = arith.constant dense<0.000000e+00> : vector<128xf32>
    %14 = vector.multi_reduction <add>, %13, %cst_13 [0] : vector<256x128xf32> to vector<128xf32>
    %15 = vector.shape_cast %14 : vector<128xf32> to vector<1x128xf32>
    %16 = arith.addf %12, %15 : vector<1x128xf32>
    %c0_14 = arith.constant 0 : index
    %c0_15 = arith.constant 0 : index
    %17 = vector.load %arg5[%c0_14, %c0_15] : memref<1x128xf32, #tpu.memory_space<vmem>>, vector<1x128xf32>
    tpu.vector_store %arg5[%c0_14, %c0_15], %16 {strides = array<i32>} : memref<1x128xf32, #tpu.memory_space<vmem>>, vector<1x128xf32>,
    return
  }
  func.func @transform_0(%arg0: i32) -> (i32, i32) {
    %c0_i32 = arith.constant 0 : i32
    %c0_i32_0 = arith.constant 0 : i32
    return %arg0, %c0_i32 : i32, i32
  }
  func.func @transform_1(%arg0: i32) -> (i32, i32) {
    %c0_i32 = arith.constant 0 : i32
    %c0_i32_0 = arith.constant 0 : i32
    %c0_i32_1 = arith.constant 0 : i32
    return %c0_i32, %c0_i32_0 : i32, i32
  }
  func.func @transform_2(%arg0: i32) -> (i32, i32) {
    %c0_i32 = arith.constant 0 : i32
    %c0_i32_0 = arith.constant 0 : i32
    return %arg0, %c0_i32 : i32, i32
  }
  func.func @transform_3(%arg0: i32) -> (i32, i32) {
    %c0_i32 = arith.constant 0 : i32
    %c0_i32_0 = arith.constant 0 : i32
    %c0_i32_1 = arith.constant 0 : i32
    return %c0_i32, %c0_i32_0 : i32, i32
  }
  func.func @transform_4(%arg0: i32) -> (i32, i32) {
    %c0_i32 = arith.constant 0 : i32
    %c0_i32_0 = arith.constant 0 : i32
    %c0_i32_1 = arith.constant 0 : i32
    return %c0_i32, %c0_i32_0 : i32, i32
  }
}

</mosaic_0001>

<bundles_post_ra>
// kernel: tpu_custom_call.1
= control target key start
LH: loop header
LB: loop body
LE: loop exit
PB: predicated region body
PF: predicated region fallthrough
CT: control target
= control target key end

     0   :  { %10 = vsyncpa [#allocation3], 0  ;;  %s1737_s0 = inlined_call_operand.hbm [shape: bf16[512,128], index: 0, kind: input, shape index: {}]   ;;  %s1738_s1 = inlined_call_operand.hbm [shape: bf16[128,128], index: 1, kind: input, shape index: {}]   ;;  %s1739_s2 = inlined_call_operand.hbm [shape: f32[512,128], index: 2, kind: output, shape index: {0}]   ;;  %s1740_s3 = inlined_call_operand.hbm [shape: f32[1,128], index: 3, kind: output, shape index: {1}]   ;;  %s1741_s4 = inlined_call_operand.hbm [shape: f32[1,128], index: 4, kind: output, shape index: {2}]  }
   0x1   :  { %12 = vsyncpa [#allocation3 + $0x1], 0 }
   0x2   :  { %13 = vsyncpa [#allocation6], 0 }
   0x3   :  { %14 = vsyncpa [#allocation4], 0 }
   0x4   :  { %16 = vsyncpa [#allocation4 + $0x1], 0 }
   0x5   :  { %17 = vsyncpa [#allocation9], 0  ;;  %s1329_s15 = smov 0   ;;  %s1331_s16 = smov 0  }
   0x6   :  { %s1333_s17 = smov 0   ;;  %s1335_s18 = smov 0  }
   0x7 LB: > { %s1350_s19 = sadd.s32 4294967295, %s1292_s18   ;;  %s873_s20 = sadd.s32 4294967294, %s1292_s18   ;;  %s1292_s18 = sphi %s1335_s18, %s1769_s18   ;;  %s1288_s17 = sphi %s1333_s17, %s1768_s17   ;;  %s1284_s16 = sphi %s1331_s16, %s1767_s16   ;;  %s1280_s15 = sphi %s1329_s15, %s1766_s15  }
   0x8   : > { %p43_p0 = scmp.ne.s32.totalorder %s1284_s16, %s1280_s15  ;;  %p1742_p1 = scmp.eq.s32.totalorder %s1350_s19, 0 }
   0x9   : > { %p94_p3 = scmp.eq.s32.totalorder %s873_s20, 1  ;;  %p874_p5 = scmp.ge.s32.totalorder %s1292_s18, 1 }
   0xa   : > { %p1359_p4 = por %p1742_p1, %p43_p0  ;;  %p143_p7 = scmp.lt.s32.totalorder %s1292_s18, 3 }
   0xb   : > { %p1364_p6 = por %p94_p3, %p43_p0  ;;  %s1294_s24 = smov [#allocation5]  }
   0xc   : > { %s1745_s21 = scalar_select %p1359_p4, 1, 0 }
   0xd   : > { %s1746_s22 = scalar_select %p1364_p6, 1, 0 }
   0xe   : > { %p1370_p9 = pnand %p874_p5, %p143_p7  ;;  %s155_s25 = sshll.u32 %s1294_s24, 4  ;;  %s1374_s25 = int_to_ptr.vmem [resolvable:$true] %s155_s25 }
   0xf   : > { %s1386_s27 = sadd.s32 1, %s1292_s18   ;;  %s30_s28 = sadd.s32 1, %s1288_s17 }
  0x10   : > { %s1747_s23 = scalar_select %p1370_p9, 1, 0 }
  0x11   : > { %p1024_p10 = pneg %p1370_p9  ;;  %s27_s29 = ssub.s32 %s1292_s18, %s1386_s27 }
  0x12   : > { %s1108_s6 = scalar_lea.hbm %s1738_s1, 1024 }
  0x13   : > { %p1381_p12 = pnand %p1024_p10, %p1742_p1  ;;  %p1109_p13 = scmp.ne.s32.totalorder %s1738_s1, %s1108_s6 }
  0x14   : > { %p1115_p7 = scmp.lt.u32.totalorder %s1108_s6, %s1738_s1 }
  0x15   : > { %p1110_p0 = pneg %p1381_p12 }
  0x17   : > { %p1111_p3 = pnand %p1110_p0, %p1109_p13 }
  0x19   : > { %p1112_p5 = pneg %p1111_p3 }
  0x1b   : > { %p1117_p10 = pnand %p1115_p7, %p1112_p5 }
  0x1d   : > { %1120 = shalt.err (!%p1117_p10)
}
  0x1e   : > { %s1121_s11 = scalar_lea.vmem %s1374_s25, 1024  ;;  %p1129_p2 = scmp.lt.s32.totalorder %s1374_s25, %s1374_s25 }
  0x1f   : > { %p1122_p11 = scmp.ne.s32.totalorder %s1374_s25, %s1121_s11  ;;  %p1130_p6 = scmp.lt.s32.totalorder %s1121_s11, %s1121_s11 }
  0x21   : > { %p1124_p8 = pnand %p1122_p11, %p1110_p0  ;;  %p1131_p4 = por %p1130_p6, %p1129_p2 }
  0x23   : > { %p1125_p1 = pneg %p1124_p8 }
  0x25   : > { %p1132_p9 = pnand %p1131_p4, %p1125_p1 }
  0x27   : > { %1135 = shalt.err (!%p1132_p9)
}
  0x28   : > { %s1295_s12 = smov 64   ;;  %s1296_s13 = smov 4  }
  0x29   : > { %1027 = dma.hbm_to_vmem [thread:$0]  (!%p1381_p12), %s1738_s1, 1024, %s1374_s25, [#allocation6], %s1295_s12, %s1295_s12, %s1296_s13  }
  0x2a   : > { %p28_p1 = scmp.eq.s32.totalorder %s27_s29, 0  ;;  %p37_p2 = scmp.ne.s32.totalorder %s1288_s17, %s1284_s16 }
  0x2b   : > { %p38_p4 = scmp.eq.s32.totalorder %s1292_s18, 0  ;;  %p1037_p6 = scmp.lt.s32.totalorder %s1292_s18, 2 }
  0x2c   : > { %s1420_s24 = scalar_select %p28_p1, %s1288_s17, %s30_s28  }
  0x2d   : > { %p39_p8 = por %p38_p4, %p37_p2  ;;  %p1749_p9 = scmp.eq.s32.totalorder %s1350_s19, 1 }
  0x2e   : > { %s169_s26 = sand.u32 1, %s1288_s17   ;;  %s918_s5 = sshll.u32 %s1292_s18, 11 }
  0x2f   : > { %p1424_p11 = por %p1749_p9, %p37_p2  ;;  %s877_s6 = sshll.u32 %s169_s26, 7 }
  0x30   : > { %s1433_s9 = scalar_lea.hbm %s1737_s0, %s918_s5  ;;  %s173_s25 = scalar_lea.vmem [#allocation2], %s877_s6 }
  0x31   : > { %s180_s28 = sshll.u32 %s173_s25, 4  ;;  %p1435_p12 = pnand %p1037_p6, %p39_p8  ;;  %s1439_s28 = int_to_ptr.vmem [resolvable:$true] %s180_s28 }
  0x32   : > { %s1441_s10 = scalar_lea.sflag [#allocation3], %s169_s26  ;;  %s1136_s11 = scalar_lea.hbm %s1433_s9, 2048 }
  0x33   : > { %p1137_p13 = scmp.ne.s32.totalorder %s1433_s9, %s1136_s11  ;;  %p1138_p0 = pneg %p1435_p12 }
  0x34   : > { %s1141_s5 = scalar_lea.hbm %s1737_s0, 4096  ;;  %p1142_p7 = scmp.lt.u32.totalorder %s1433_s9, %s1737_s0 }
  0x35   : > { %p1139_p3 = pnand %p1138_p0, %p1137_p13  ;;  %p1143_p10 = scmp.lt.u32.totalorder %s1141_s5, %s1136_s11 }
  0x36   : > { %p1145_p2 = scmp.lt.u32.totalorder %s1136_s11, %s1433_s9 }
  0x37   : > { %p1140_p5 = pneg %p1139_p3  ;;  %p1144_p1 = por %p1143_p10, %p1142_p7 }
  0x39   : > { %p1146_p4 = por %p1145_p2, %p1144_p1 }
  0x3b   : > { %p1147_p6 = pnand %p1146_p4, %p1140_p5 }
  0x3d   : > { %1150 = shalt.err (!%p1147_p6)
}
  0x3e   : > { %s1151_s26 = scalar_lea.vmem %s1439_s28, 2048  ;;  %s1297_s8 = smov [#allocation2]  }
  0x3f   : > { %p1152_p8 = scmp.ne.s32.totalorder %s1439_s28, %s1151_s26  ;;  %s1156_s25 = sshll.u32 %s1297_s8, 4  ;;  %s1157_s25 = int_to_ptr.vmem [resolvable:$false] %s1156_s25 }
  0x40   : > { %s1158_s14 = scalar_lea.vmem %s1157_s25, 4096  ;;  %p1159_p3 = scmp.lt.s32.totalorder %s1439_s28, %s1157_s25 }
  0x41   : > { %p1154_p9 = pnand %p1152_p8, %p1138_p0  ;;  %p1160_p7 = scmp.lt.s32.totalorder %s1158_s14, %s1151_s26 }
  0x43   : > { %p1155_p13 = pneg %p1154_p9  ;;  %p1161_p10 = por %p1160_p7, %p1159_p3 }
  0x45   : > { %p1162_p1 = pnand %p1161_p10, %p1155_p13 }
  0x47   : > { %1165 = shalt.err (!%p1162_p1)
}
  0x48   : > { %1031 = dma.hbm_to_vmem [thread:$0]  (!%p1435_p12), %s1433_s9, 2048, %s1439_s28, %s1441_s10, %s1295_s12, %s1295_s12, %s1296_s13  }
  0x49   : > { %p1752_p0 = scmp.ne.s32.totalorder %s1747_s23, 0 }
  0x4a   : > { %s1475_s11 = sand.u32 (!%p1752_p0), 1, %s1284_s16   ;;  %p1753_p5 = scmp.ne.s32.totalorder (!%p1752_p0), %s1745_s21, 0 }
  0x4b   : > { %192 = sbr.rel (%p1752_p0) target bundleno = 469 (0x1d5), region = 28  ;;  %s881_s20 = sshll.u32 (!%p1752_p0), %s1475_s11, 7 }
  0x4c   : > { %s195_s5 = scalar_lea.sflag (!%p1752_p0), [#allocation3], %s1475_s11  ;;  %s1479_s6 = scalar_lea.vmem (!%p1752_p0), [#allocation2], %s881_s20 }
  0x52   : > { %1263 = dma.done.wait (%p1753_p5), %s195_s5, 2048  }
  0x53   : > { %1265 = vsyncadd (%p1753_p5), %s195_s5, 4294965248  ;;  %p1754_p12 = scmp.eq.s32.totalorder %s1350_s19, 0 }
  0x55   : > { %1267 = dma.done.wait (%p1754_p12), [#allocation6], 1024   ;;  %p1755_p2 = pmov %p1754_p12 }
  0x56   : > { %s883_s23 = sshll.u32 %s1475_s11, 8  ;;  %p1756_p4 = scmp.ne.s32.totalorder %s1350_s19, 0 }
  0x57   : > { %1269 = vsyncadd (%p1755_p2), [#allocation6], 4294966272  ;;  %s1490_s12 = scalar_lea.vmem [#allocation7], %s883_s23  ;;  %v1298_v0 = vmov (!%p1756_p4), 0.0  }
  0x58   : > { %233 = sbr.rel (%p1756_p4) target bundleno = 95 (0x5f), region = 40  ;;  %234 = vst [vmem:[#allocation8] sm:$0x1] (!%p1756_p4), %v1298_v0  ;;  %235 = vst [vmem:[#allocation10] sm:$0x1] (!%p1756_p4), %v1298_v0 }
  0x5f PF: > { %v1084_v1 = vld [vmem:[#allocation5] sm:$0xff]   ;;  %v1085_v2 = vld [vmem:[#allocation5 + $0x8] sm:$0xff]   ;;  %v1086_v3 = vld [vmem:[#allocation5 + $0x10] sm:$0xff]   ;;  %s919_s21 = sshll.u32 %s1350_s19, 12  ;;  %s747_s13 = sshll.u32 %s1490_s12, 4  ;;  %s1584_s13 = int_to_ptr.vmem [resolvable:$true] %s747_s13 }
  0x60   : > { %944 = vmatprep.subr.bf16.mxu0 %v1084_v1  ;;  %992 = vmatprep.subr.bf16.mxu1 %v1084_v1  ;;  %v1087_v4 = vld [vmem:[#allocation5 + $0x18] sm:$0xff]   ;;  %v1092_v5 = vld [vmem:[%s1479_s6] sm:$0xff]   ;;  %v1089_v7 = vld [vmem:[#allocation5 + $0x28] sm:$0xff]   ;;  %s1582_s29 = scalar_lea.hbm %s1739_s2, %s919_s21  ;;  %s734_s10 = scalar_lea.sflag [#allocation4], %s1475_s11 }
  0x61   : > { %945 = vmatpush3.bf16.msra.mxu0 %v1084_v1  ;;  %1000 = vmatpush3.bf16.msra.mxu1 %v1084_v1  ;;  %v1088_v6 = vld [vmem:[#allocation5 + $0x20] sm:$0xff]   ;;  %v1090_v9 = vld [vmem:[#allocation5 + $0x30] sm:$0xff]   ;;  %v1091_v10 = vld [vmem:[#allocation5 + $0x38] sm:$0xff]   ;;  %s1166_s7 = scalar_lea.vmem %s1584_s13, 4096  ;;  %s1299_s26 = smov [#allocation7]  }
  0x62   : > { %946 = vmatprep.subr.bf16.mxu0 %v1085_v2  ;;  %993 = vmatprep.subr.bf16.mxu1 %v1085_v2  ;;  %v1100_v8 = vld [vmem:[%s1479_s6 + $0x40] sm:$0xff]   ;;  %v1093_v11 = vld [vmem:[%s1479_s6 + $0x8] sm:$0xff]   ;;  %v1094_v13 = vld [vmem:[%s1479_s6 + $0x10] sm:$0xff]   ;;  %p1167_p6 = scmp.ne.s32.totalorder %s1584_s13, %s1166_s7  ;;  %s1170_s8 = sshll.u32 %s1299_s26, 4  ;;  %s1171_s8 = int_to_ptr.vmem [resolvable:$false] %s1170_s8 }
  0x63   : > { %960 = vmatprep.mubr.bf16.mxu0 %v1092_v5  ;;  %976 = vmatprep.mubr.bf16.mxu1 %v1100_v8  ;;  %v1101_v12 = vld [vmem:[%s1479_s6 + $0x48] sm:$0xff]   ;;  %v1102_v14 = vld [vmem:[%s1479_s6 + $0x50] sm:$0xff]   ;;  %v1095_v15 = vld [vmem:[%s1479_s6 + $0x18] sm:$0xff]   ;;  %s1172_s25 = scalar_lea.vmem %s1171_s8, 8192  ;;  %p1173_p13 = scmp.lt.s32.totalorder %s1584_s13, %s1171_s8 }
  0x64   : > { %v1103_v16 = vld [vmem:[%s1479_s6 + $0x58] sm:$0xff]   ;;  %v1096_v17 = vld [vmem:[%s1479_s6 + $0x20] sm:$0xff]   ;;  %v1097_v19 = vld [vmem:[%s1479_s6 + $0x28] sm:$0xff]   ;;  %p1168_p8 = pnand %p1167_p6, %p1424_p11  ;;  %p1174_p3 = scmp.lt.s32.totalorder %s1172_s25, %s1166_s7 }
  0x65   : > { %947 = vmatpush3.bf16.msra.mxu0 %v1085_v2  ;;  %1001 = vmatpush3.bf16.msra.mxu1 %v1085_v2  ;;  %v1104_v18 = vld [vmem:[%s1479_s6 + $0x60] sm:$0xff]   ;;  %v1105_v20 = vld [vmem:[%s1479_s6 + $0x68] sm:$0xff]   ;;  %v1098_v21 = vld [vmem:[%s1479_s6 + $0x30] sm:$0xff]  }
  0x66   : > { %948 = vmatprep.subr.bf16.mxu0 %v1086_v3  ;;  %994 = vmatprep.subr.bf16.mxu1 %v1086_v3  ;;  %v1106_v22 = vld [vmem:[%s1479_s6 + $0x70] sm:$0xff]   ;;  %v1099_v23 = vld [vmem:[%s1479_s6 + $0x38] sm:$0xff]   ;;  %p1169_p9 = pneg %p1168_p8  ;;  %p1175_p7 = por %p1174_p3, %p1173_p13 }
  0x67   : > { %v1107_v24 = vld [vmem:[%s1479_s6 + $0x78] sm:$0xff]  }
  0x68   : > { %p1176_p10 = pnand %p1175_p7, %p1169_p9 }
  0x69   : > { %949 = vmatpush3.bf16.msra.mxu0 %v1086_v3  ;;  %1002 = vmatpush3.bf16.msra.mxu1 %v1086_v3 }
  0x6a   : > { %950 = vmatprep.subr.bf16.mxu0 %v1087_v4  ;;  %995 = vmatprep.subr.bf16.mxu1 %v1087_v4 }
  0x6d   : > { %951 = vmatpush3.bf16.msra.mxu0 %v1087_v4  ;;  %1003 = vmatpush3.bf16.msra.mxu1 %v1087_v4 }
  0x6e   : > { %952 = vmatprep.subr.bf16.mxu0 %v1088_v6  ;;  %996 = vmatprep.subr.bf16.mxu1 %v1088_v6 }
  0x71   : > { %953 = vmatpush3.bf16.msra.mxu0 %v1088_v6  ;;  %1004 = vmatpush3.bf16.msra.mxu1 %v1088_v6 }
  0x72   : > { %954 = vmatprep.subr.bf16.mxu0 %v1089_v7  ;;  %997 = vmatprep.subr.bf16.mxu1 %v1089_v7 }
  0x75   : > { %955 = vmatpush3.bf16.msra.mxu0 %v1089_v7  ;;  %1005 = vmatpush3.bf16.msra.mxu1 %v1089_v7 }
  0x76   : > { %956 = vmatprep.subr.bf16.mxu0 %v1090_v9  ;;  %998 = vmatprep.subr.bf16.mxu1 %v1090_v9 }
  0x79   : > { %957 = vmatpush3.bf16.msra.mxu0 %v1090_v9  ;;  %1006 = vmatpush3.bf16.msra.mxu1 %v1090_v9 }
  0x7a   : > { %958 = vmatprep.subr.bf16.mxu0 %v1091_v10  ;;  %999 = vmatprep.subr.bf16.mxu1 %v1091_v10 }
  0x7d   : > { %959 = vmatpush3.bf16.msra.mxu0 %v1091_v10  ;;  %1007 = vmatpush3.bf16.msra.mxu1 %v1091_v10 }
  0x80   : > { %961 = vmatmul.mubr.bf16.vlgmr.msra.gmra.mrb[0].mxu0 %v1093_v11  ;;  %977 = vmatmul.mubr.bf16.vlgmr.msra.gmra.mrb[0].mxu1 %v1101_v12 }
  0x81   : > { %964 = vmatprep.mubr.bf16.mxu0 %v1094_v13  ;;  %980 = vmatprep.mubr.bf16.mxu1 %v1102_v14 }
  0x88   : > { %965 = vmatmul.mubr.bf16.gmra.mrb[4].mxu0 %v1095_v15  ;;  %981 = vmatmul.mubr.bf16.gmra.mrb[4].mxu1 %v1103_v16 }
  0x89   : > { %968 = vmatprep.mubr.bf16.mxu0 %v1096_v17  ;;  %984 = vmatprep.mubr.bf16.mxu1 %v1104_v18 }
  0x90   : > { %969 = vmatmul.mubr.bf16.gmra.mrb[8].mxu0 %v1097_v19  ;;  %985 = vmatmul.mubr.bf16.gmra.mrb[8].mxu1 %v1105_v20 }
  0x91   : > { %972 = vmatprep.mubr.bf16.mxu0 %v1098_v21  ;;  %988 = vmatprep.mubr.bf16.mxu1 %v1106_v22 }
  0x98   : > { %973 = vmatmul.mubr.bf16.gmra.mrb[12].mxu0 %v1099_v23  ;;  %989 = vmatmul.mubr.bf16.gmra.mrb[12].mxu1 %v1107_v24 }
 0x153   : > { %v962_v25 = vpop.f32.mrb[0].mxu0  ;;  %v1510_v26 = vpop.f32.mrb[0].mxu1 }
 0x154   : > { %591 = vst [vmem:[%s1490_s12 + $0x10] sm:$0xff] %v962_v25  ;;  %v462_v27 = vpop.f32.mrb[1].mxu0  ;;  %607 = vst [vmem:[%s1490_s12 + $0x90] sm:$0xff] %v1510_v26  ;;  %v1515_v28 = vpop.f32.mrb[1].mxu1  ;;  %v664_v36 = vmul.f32 %v962_v25, %v962_v25 }
 0x155   : > { %589 = vst [vmem:[%s1490_s12] sm:$0xff] %v462_v27  ;;  %v963_v29 = vpop.f32.mrb[2].mxu0  ;;  %605 = vst [vmem:[%s1490_s12 + $0x80] sm:$0xff] %v1515_v28  ;;  %v1520_v30 = vpop.f32.mrb[2].mxu1  ;;  %v662_v33 = vmul.f32 %v462_v27, %v462_v27 }
 0x156   : > { %592 = vst [vmem:[%s1490_s12 + $0x18] sm:$0xff] %v963_v29  ;;  %v465_v31 = vpop.f32.mrb[3].mxu0  ;;  %608 = vst [vmem:[%s1490_s12 + $0x98] sm:$0xff] %v1520_v30  ;;  %v1525_v32 = vpop.f32.mrb[3].mxu1  ;;  %v665_v39 = vmul.f32 %v963_v29, %v963_v29 }
 0x157   : > { %590 = vst [vmem:[%s1490_s12 + $0x8] sm:$0xff] %v465_v31  ;;  %v622_v34 = vadd.f32 %v465_v31, %v462_v27  ;;  %v663_v35 = vmul.f32 %v465_v31, %v465_v31  ;;  %606 = vst [vmem:[%s1490_s12 + $0x88] sm:$0xff] %v1525_v32 }
 0x159   : > { %v623_v37 = vadd.f32 %v962_v25, %v622_v34  ;;  %v694_v38 = vadd.f32 %v663_v35, %v662_v33 }
 0x15b   : > { %v695_v40 = vadd.f32 %v694_v38, %v664_v36  ;;  %v966_v41 = vpop.f32.mrb[4].mxu0  ;;  %v624_v42 = vadd.f32 %v963_v29, %v623_v37  ;;  %v1530_v43 = vpop.f32.mrb[4].mxu1 }
 0x15c   : > { %595 = vst [vmem:[%s1490_s12 + $0x30] sm:$0xff] %v966_v41  ;;  %v478_v44 = vpop.f32.mrb[5].mxu0  ;;  %611 = vst [vmem:[%s1490_s12 + $0xb0] sm:$0xff] %v1530_v43  ;;  %v1535_v45 = vpop.f32.mrb[5].mxu1  ;;  %v668_v56 = vmul.f32 %v966_v41, %v966_v41 }
 0x15d   : > { %593 = vst [vmem:[%s1490_s12 + $0x20] sm:$0xff] %v478_v44  ;;  %v625_v46 = vadd.f32 %v624_v42, %v478_v44  ;;  %v666_v47 = vmul.f32 %v478_v44, %v478_v44  ;;  %v696_v48 = vadd.f32 %v695_v40, %v665_v39  ;;  %v967_v49 = vpop.f32.mrb[6].mxu0  ;;  %609 = vst [vmem:[%s1490_s12 + $0xa0] sm:$0xff] %v1535_v45  ;;  %v1540_v50 = vpop.f32.mrb[6].mxu1 }
 0x15e   : > { %596 = vst [vmem:[%s1490_s12 + $0x38] sm:$0xff] %v967_v49  ;;  %v481_v51 = vpop.f32.mrb[7].mxu0  ;;  %612 = vst [vmem:[%s1490_s12 + $0xb8] sm:$0xff] %v1540_v50  ;;  %v1545_v52 = vpop.f32.mrb[7].mxu1  ;;  %v669_v59 = vmul.f32 %v967_v49, %v967_v49 }
 0x15f   : > { %v697_v53 = vadd.f32 %v696_v48, %v666_v47  ;;  %594 = vst [vmem:[%s1490_s12 + $0x28] sm:$0xff] %v481_v51  ;;  %v626_v54 = vadd.f32 %v625_v46, %v481_v51  ;;  %v667_v55 = vmul.f32 %v481_v51, %v481_v51  ;;  %610 = vst [vmem:[%s1490_s12 + $0xa8] sm:$0xff] %v1545_v52 }
 0x161   : > { %v627_v57 = vadd.f32 %v966_v41, %v626_v54  ;;  %v698_v58 = vadd.f32 %v697_v53, %v667_v55 }
 0x163   : > { %v699_v60 = vadd.f32 %v698_v58, %v668_v56  ;;  %v970_v61 = vpop.f32.mrb[8].mxu0  ;;  %v628_v62 = vadd.f32 %v967_v49, %v627_v57  ;;  %v1550_v63 = vpop.f32.mrb[8].mxu1 }
 0x164   : > { %599 = vst [vmem:[%s1490_s12 + $0x50] sm:$0xff] %v970_v61  ;;  %v494_v0 = vpop.f32.mrb[9].mxu0  ;;  %615 = vst [vmem:[%s1490_s12 + $0xd0] sm:$0xff] %v1550_v63  ;;  %v1555_v1 = vpop.f32.mrb[9].mxu1  ;;  %v672_v12 = vmul.f32 %v970_v61, %v970_v61 }
 0x165   : > { %597 = vst [vmem:[%s1490_s12 + $0x40] sm:$0xff] %v494_v0  ;;  %v629_v2 = vadd.f32 %v628_v62, %v494_v0  ;;  %v670_v3 = vmul.f32 %v494_v0, %v494_v0  ;;  %v700_v4 = vadd.f32 %v699_v60, %v669_v59  ;;  %v971_v5 = vpop.f32.mrb[10].mxu0  ;;  %613 = vst [vmem:[%s1490_s12 + $0xc0] sm:$0xff] %v1555_v1  ;;  %v1560_v6 = vpop.f32.mrb[10].mxu1 }
 0x166   : > { %600 = vst [vmem:[%s1490_s12 + $0x58] sm:$0xff] %v971_v5  ;;  %v497_v7 = vpop.f32.mrb[11].mxu0  ;;  %616 = vst [vmem:[%s1490_s12 + $0xd8] sm:$0xff] %v1560_v6  ;;  %v1565_v8 = vpop.f32.mrb[11].mxu1  ;;  %v673_v15 = vmul.f32 %v971_v5, %v971_v5 }
 0x167   : > { %v701_v9 = vadd.f32 %v700_v4, %v670_v3  ;;  %598 = vst [vmem:[%s1490_s12 + $0x48] sm:$0xff] %v497_v7  ;;  %v630_v10 = vadd.f32 %v629_v2, %v497_v7  ;;  %v671_v11 = vmul.f32 %v497_v7, %v497_v7  ;;  %614 = vst [vmem:[%s1490_s12 + $0xc8] sm:$0xff] %v1565_v8 }
 0x169   : > { %v631_v13 = vadd.f32 %v970_v61, %v630_v10  ;;  %v702_v14 = vadd.f32 %v701_v9, %v671_v11 }
 0x16b   : > { %v703_v16 = vadd.f32 %v702_v14, %v672_v12  ;;  %v974_v17 = vpop.f32.mrb[12].mxu0  ;;  %v632_v18 = vadd.f32 %v971_v5, %v631_v13  ;;  %v1572_v19 = vpop.f32.mrb[12].mxu1 }
 0x16c   : > { %603 = vst [vmem:[%s1490_s12 + $0x70] sm:$0xff] %v974_v17  ;;  %v510_v20 = vpop.f32.mrb[13].mxu0  ;;  %619 = vst [vmem:[%s1490_s12 + $0xf0] sm:$0xff] %v1572_v19  ;;  %v1577_v21 = vpop.f32.mrb[13].mxu1 }
 0x16d   : > { %601 = vst [vmem:[%s1490_s12 + $0x60] sm:$0xff] %v510_v20  ;;  %v633_v22 = vadd.f32 %v632_v18, %v510_v20  ;;  %v674_v23 = vmul.f32 %v510_v20, %v510_v20  ;;  %v704_v24 = vadd.f32 %v703_v16, %v673_v15  ;;  %v975_v25 = vpop.f32.mrb[14].mxu0  ;;  %617 = vst [vmem:[%s1490_s12 + $0xe0] sm:$0xff] %v1577_v21  ;;  %v1589_v27 = vpop.f32.mrb[14].mxu1 }
 0x16e   : > { %604 = vst [vmem:[%s1490_s12 + $0x78] sm:$0xff] %v975_v25  ;;  %v513_v29 = vpop.f32.mrb[15].mxu0  ;;  %620 = vst [vmem:[%s1490_s12 + $0xf8] sm:$0xff] %v1589_v27  ;;  %v1594_v31 = vpop.f32.mrb[15].mxu1 }
 0x16f   : > { %v705_v33 = vadd.f32 %v704_v24, %v674_v23  ;;  %602 = vst [vmem:[%s1490_s12 + $0x68] sm:$0xff] %v513_v29  ;;  %v634_v34 = vadd.f32 %v633_v22, %v513_v29  ;;  %v675_v35 = vmul.f32 %v513_v29, %v513_v29  ;;  %618 = vst [vmem:[%s1490_s12 + $0xe8] sm:$0xff] %v1594_v31 }
 0x170   : > { %1179 = shalt.err (!%p1176_p10)
}
 0x171   : > { %s1180_s14 = scalar_lea.hbm %s1582_s29, 4096  ;;  %s1184_s6 = scalar_lea.hbm %s1739_s2, 8192 }
 0x172   : > { %p1181_p1 = scmp.ne.s32.totalorder %s1582_s29, %s1180_s14  ;;  %p1185_p12 = scmp.lt.u32.totalorder %s1582_s29, %s1739_s2 }
 0x173   : > { %p1186_p2 = scmp.lt.u32.totalorder %s1184_s6, %s1180_s14  ;;  %p1188_p6 = scmp.lt.u32.totalorder %s1180_s14, %s1582_s29 }
 0x174   : > { %p1182_p0 = pnand %p1181_p1, %p1424_p11 }
 0x175   : > { %p1187_p4 = por %p1186_p2, %p1185_p12 }
 0x176   : > { %p1183_p5 = pneg %p1182_p0 }
 0x177   : > { %p1189_p8 = por %p1188_p6, %p1187_p4 }
 0x179   : > { %p1190_p9 = pnand %p1189_p8, %p1183_p5 }
 0x17b   : > { %1193 = shalt.err (!%p1190_p9)
}
 0x17c   : > { %s1300_s21 = smov 128   ;;  %s1301_s9 = smov 8   ;;  %v676_v36 = vmul.f32 %v974_v17, %v974_v17  ;;  %v635_v37 = vadd.f32 %v974_v17, %v634_v34  ;;  %v706_v38 = vadd.f32 %v705_v33, %v675_v35  ;;  %v677_v39 = vmul.f32 %v975_v25, %v975_v25 }
 0x17d   : > { %1014 = dma.vmem_to_hbm [thread:$0]  (%p1424_p11), %s1584_s13, 4096, %s1582_s29, %s734_s10, %s1300_s21, %s1300_s21, %s1301_s9   ;;  %v678_v42 = vmul.f32 %v1515_v28, %v1515_v28  ;;  %v679_v49 = vmul.f32 %v1525_v32, %v1525_v32  ;;  %v680_v51 = vmul.f32 %v1510_v26, %v1510_v26  ;;  %v681_v55 = vmul.f32 %v1520_v30, %v1520_v30 }
 0x17e   : > { %v707_v40 = vadd.f32 %v706_v38, %v676_v36  ;;  %v636_v41 = vadd.f32 %v975_v25, %v635_v37  ;;  %v683_v61 = vmul.f32 %v1545_v52, %v1545_v52  ;;  %v687_v9 = vmul.f32 %v1565_v8, %v1565_v8  ;;  %v621_v38 = vld [vmem:[#allocation8] sm:$0x1]  ;;  %s1302_s30 = smov [#allocation8]   ;;  %s1303_s13 = smov [#allocation10]  }
 0x17f   : > { %v691_v17 = vmul.f32 %v1594_v31, %v1594_v31  ;;  %s761_s11 = sshll.u32 %s1302_s30, 4  ;;  %s772_s28 = sshll.u32 %s1303_s13, 4  ;;  %s762_s11 = int_to_ptr.vmem [resolvable:$true] %s761_s11  ;;  %s1671_s28 = int_to_ptr.vmem [resolvable:$true] %s772_s28 }
 0x180   : > { %v637_v44 = vadd.f32 %v636_v41, %v1515_v28  ;;  %v708_v46 = vadd.f32 %v707_v40, %v677_v39  ;;  %v682_v28 = vmul.f32 %v1535_v45, %v1535_v45  ;;  %v661_v40 = vld [vmem:[#allocation10] sm:$0x1]  ;;  %s1194_s29 = scalar_lea.vmem %s762_s11, 16  ;;  %p1757_p13 = scmp.eq.s32.totalorder %s1350_s19, 1 }
 0x181   : > { %p1195_p11 = scmp.ne.s32.totalorder %s762_s11, %s1194_s29  ;;  %s1200_s10 = scalar_lea.vmem %s762_s11, 32 }
 0x182   : > { %v709_v47 = vadd.f32 %v708_v46, %v678_v42  ;;  %v638_v48 = vadd.f32 %v637_v44, %v1525_v32  ;;  %p1201_p10 = scmp.lt.s32.totalorder %s762_s11, %s762_s11  ;;  %p1202_p1 = scmp.lt.s32.totalorder %s1200_s10, %s1194_s29 }
 0x183   : > { %p1196_p3 = pnand %p1195_p11, %p1757_p13 }
 0x184   : > { %v639_v53 = vadd.f32 %v1510_v26, %v638_v48  ;;  %v710_v54 = vadd.f32 %v709_v47, %v679_v49  ;;  %v684_v26 = vmul.f32 %v1530_v43, %v1530_v43  ;;  %p1203_p0 = por %p1202_p1, %p1201_p10 }
 0x185   : > { %p1197_p7 = pneg %p1196_p3 }
 0x186   : > { %v711_v56 = vadd.f32 %v710_v54, %v680_v51  ;;  %v640_v57 = vadd.f32 %v1520_v30, %v639_v53  ;;  %v685_v30 = vmul.f32 %v1540_v50, %v1540_v50 }
 0x187   : > { %p1204_p5 = pnand %p1203_p0, %p1197_p7 }
 0x188   : > { %v641_v58 = vadd.f32 %v640_v57, %v1535_v45  ;;  %v712_v59 = vadd.f32 %v711_v56, %v681_v55  ;;  %v686_v45 = vmul.f32 %v1555_v1, %v1555_v1 }
 0x18a   : > { %v713_v60 = vadd.f32 %v712_v59, %v682_v28  ;;  %v642_v32 = vadd.f32 %v641_v58, %v1545_v52 }
 0x18c   : > { %v643_v62 = vadd.f32 %v1530_v43, %v642_v32  ;;  %v714_v0 = vadd.f32 %v713_v60, %v683_v61  ;;  %v688_v43 = vmul.f32 %v1550_v63, %v1550_v63 }
 0x18e   : > { %v715_v2 = vadd.f32 %v714_v0, %v684_v26  ;;  %v644_v3 = vadd.f32 %v1540_v50, %v643_v62  ;;  %v689_v50 = vmul.f32 %v1560_v6, %v1560_v6 }
 0x190   : > { %v645_v4 = vadd.f32 %v644_v3, %v1555_v1  ;;  %v716_v5 = vadd.f32 %v715_v2, %v685_v30  ;;  %v690_v1 = vmul.f32 %v1577_v21, %v1577_v21 }
 0x192   : > { %v717_v7 = vadd.f32 %v716_v5, %v686_v45  ;;  %v646_v52 = vadd.f32 %v645_v4, %v1565_v8 }
 0x194   : > { %v647_v10 = vadd.f32 %v1550_v63, %v646_v52  ;;  %v718_v11 = vadd.f32 %v717_v7, %v687_v9  ;;  %v692_v63 = vmul.f32 %v1572_v19, %v1572_v19 }
 0x196   : > { %v719_v12 = vadd.f32 %v718_v11, %v688_v43  ;;  %v648_v13 = vadd.f32 %v1560_v6, %v647_v10  ;;  %v693_v6 = vmul.f32 %v1589_v27, %v1589_v27 }
 0x198   : > { %v649_v14 = vadd.f32 %v648_v13, %v1577_v21  ;;  %v720_v15 = vadd.f32 %v719_v12, %v689_v50 }
 0x19a   : > { %v721_v16 = vadd.f32 %v720_v15, %v690_v1  ;;  %v650_v8 = vadd.f32 %v649_v14, %v1594_v31 }
 0x19c   : > { %v651_v18 = vadd.f32 %v1572_v19, %v650_v8  ;;  %v722_v20 = vadd.f32 %v721_v16, %v691_v17 }
 0x19e   : > { %v652_v22 = vadd.f32 %v1589_v27, %v651_v18  ;;  %v723_v23 = vadd.f32 %v722_v20, %v692_v63 }
 0x1a0   : > { %v653_v21 = vrot.slane %v652_v22, 4  ;;  %v724_v24 = vadd.f32 %v723_v23, %v693_v6 }
 0x1a2   : > { %v654_v25 = vadd.f32 %v653_v21, %v652_v22  ;;  %v725_v29 = vrot.slane %v724_v24, 4 }
 0x1a4   : > { %v655_v33 = vrot.slane %v654_v25, 2  ;;  %v726_v34 = vadd.f32 %v725_v29, %v724_v24 }
 0x1a6   : > { %v656_v35 = vadd.f32 %v655_v33, %v654_v25  ;;  %v727_v31 = vrot.slane %v726_v34, 2 }
 0x1a8   : > { %v657_v36 = vrot.slane %v656_v35, 1  ;;  %v728_v37 = vadd.f32 %v727_v31, %v726_v34 }
 0x1aa   : > { %v658_v19 = vadd.f32 %v657_v36, %v656_v35  ;;  %v729_v39 = vrot.slane %v728_v37, 1 }
 0x1ac   : > { %v659_v27 = vadd.f32 %v658_v19, %v621_v38  ;;  %v730_v41 = vadd.f32 %v729_v39, %v728_v37 }
 0x1ae   : > { %660 = vst [vmem:[#allocation8] sm:$0x1] %v659_v27  ;;  %v731_v42 = vadd.f32 %v730_v41, %v661_v40 }
 0x1af   : > { %1207 = shalt.err (!%p1204_p5)
}
 0x1b0   : > { %s1208_s8 = scalar_lea.hbm %s1740_s3, 16  ;;  %p1758_p2 = pmov %p1757_p13 }
 0x1b1   : > { %p1209_p12 = scmp.ne.s32.totalorder %s1740_s3, %s1208_s8  ;;  %p1214_p8 = scmp.lt.u32.totalorder %s1208_s8, %s1740_s3 }
 0x1b3   : > { %p1210_p4 = pnand %p1209_p12, %p1758_p2 }
 0x1b5   : > { %p1211_p6 = pneg %p1210_p4 }
 0x1b7   : > { %p1216_p9 = pnand %p1214_p8, %p1211_p6 }
 0x1b9   : > { %1219 = shalt.err (!%p1216_p9)
}
 0x1ba   : > { %p1759_p11 = pmov %p1758_p2  ;;  %732 = vst [vmem:[#allocation10] sm:$0x1] %v731_v42  ;;  %s1220_s12 = scalar_lea.vmem %s1671_s28, 16 }
 0x1bb   : > { %p1221_p13 = scmp.ne.s32.totalorder %s1671_s28, %s1220_s12  ;;  %p1760_p3 = pmov %p1758_p2 }
 0x1bc   : > { %1016 = dma.vmem_to_hbm [thread:$0]  (%p1759_p11), %s762_s11, 16, %s1740_s3, [#allocation9]  }
 0x1bd   : > { %p1222_p7 = pnand %p1221_p13, %p1760_p3  ;;  %s1226_s21 = scalar_lea.vmem %s1671_s28, 32 }
 0x1be   : > { %p1227_p1 = scmp.lt.s32.totalorder %s1671_s28, %s1671_s28  ;;  %p1228_p0 = scmp.lt.s32.totalorder %s1226_s21, %s1220_s12 }
 0x1bf   : > { %p1223_p10 = pneg %p1222_p7 }
 0x1c0   : > { %p1229_p5 = por %p1228_p0, %p1227_p1 }
 0x1c2   : > { %p1230_p12 = pnand %p1229_p5, %p1223_p10 }
 0x1c4   : > { %1233 = shalt.err (!%p1230_p12)
}
 0x1c5   : > { %s1234_s13 = scalar_lea.hbm %s1741_s4, 16  ;;  %p1761_p4 = pmov %p1760_p3 }
 0x1c6   : > { %p1235_p2 = scmp.ne.s32.totalorder %s1741_s4, %s1234_s13  ;;  %p1240_p9 = scmp.lt.u32.totalorder %s1234_s13, %s1741_s4 }
 0x1c8   : > { %p1236_p6 = pnand %p1235_p2, %p1761_p4 }
 0x1ca   : > { %p1237_p8 = pneg %p1236_p6 }
 0x1cc   : > { %p1242_p11 = pnand %p1240_p9, %p1237_p8 }
 0x1ce   : > { %1245 = shalt.err (!%p1242_p11)
}
 0x1cf   : > { %p1762_p13 = pmov %p1760_p3 }
 0x1d1   : > { %1018 = dma.vmem_to_hbm [thread:$0]  (%p1762_p13), %s1671_s28, 16, %s1741_s4, [#allocation9]  }
 0x1d2   : > { %1271 = dma.done.wait (%p1760_p3), [#allocation9], 32   ;;  %p1763_p7 = pmov %p1760_p3 }
 0x1d4   : > { %1273 = vsyncadd (%p1763_p7), [#allocation9], 4294967264 }
 0x1d5 PF: > { %s792_s25 = sand.u32 1, %s1280_s15   ;;  %p1764_p10 = scmp.ne.s32.totalorder %s1746_s22, 0 }
 0x1d6   : > { %p1765_p1 = scmp.ge.s32.totalorder %s1292_s18, 2  ;;  %s793_s14 = scalar_lea.sflag [#allocation4], %s792_s25 }
 0x1d8   : > { %p1033_p0 = pnand %p1765_p1, %p1764_p10 }
 0x1da   : > { %1275 = dma.done.wait (!%p1033_p0), %s793_s14, 4096  }
 0x1db   : > { %1277 = vsyncadd (!%p1033_p0), %s793_s14, 4294963200  ;;  %p20_p5 = scmp.ge.s32.totalorder %s1386_s27, 4   ;;  %s1766_s15 = smov %s1284_s16 }
 0x1dc   : > { %s1767_s16 = smov %s1288_s17  ;;  %s1768_s17 = smov %s1420_s24 }
 0x1dd   : > { %s1769_s18 = smov %s1386_s27  ;;  %22 = sbr.rel (!%p20_p5) target bundleno = 7 (0x7), region = 97 }
 0x1e4   :  { %798 = vsyncpa [#allocation3], 1 }
 0x1e5   :  { %800 = vsyncpa [#allocation3 + $0x1], 1 }
 0x1e6   :  { %801 = vsyncpa [#allocation6], 1 }
 0x1e7   :  { %802 = vsyncpa [#allocation4], 1 }
 0x1e8   :  { %804 = vsyncpa [#allocation4 + $0x1], 1 }
 0x1e9   :  { %805 = vsyncpa [#allocation9], 1 }

</bundles_post_ra>
